<compile_context>
chip_gen: v6e
topology: v6e:2x2x1
jax: 0.10.0
libtpu: 0.0.40
codegen_flags: <defaults>
</compile_context>

<pallas_src>
import functools
import math

import jax
import jax.numpy as jnp
from jax.experimental import pallas as pl
from jax.experimental.pallas import tpu as pltpu

# cfg.ada_in in the reference module (wandb config); fixed here.
ADA_IN = True

# Per-grid-step work (elements) below which the ~0.35us step overhead dominates
# and a second v7x TensorCore buys nothing.
_STEP_WORK_THRESHOLD = 256 * 1024


def _gcn_block_kernel(x_ref, a_ref, w1t_ref, b1_ref, wa1t_ref, ba1_ref,
                      wa2t_ref, ba2_ref, o_ref, *, bt, s, ada_in):
    """One grid step = `bt` folded batches.

    x_ref   : (bt*s, C)     bf16 features-last activation slab
    a_ref   : (bt*s, bt*s)  bf16 block-diagonal adjacency
    w1t_ref : (C, C)        proj weight^T, WSConv scale folded
    wa1t_ref: (C, 2C)       AdaIN mlp1 weight^T, WSConv scale and 1/S folded
    wa2t_ref: (2C, 2C)      AdaIN mlp2 weight^T, WSConv scale folded
    o_ref   : (bt*s, C)     f32 output slab
    """
    c = w1t_ref.shape[1]
    cd = x_ref.dtype

    # 1x1 WSConv proj for all bt batches: one MXU matmul, f32 accumulation.
    h = jnp.dot(x_ref[...], w1t_ref[...],
                preferred_element_type=jnp.float32) + b1_ref[...]          # (bt*s, C)

    # feat = einsum('bij,bjk->bik', A, feat) as ONE block-diagonal matmul.
    g = jnp.dot(a_ref[...], h.astype(cd),
                preferred_element_type=jnp.float32)                        # (bt*s, C)
    g3 = g.reshape(bt, s, c)                                               # (bt, s, C)

    if ada_in:
        # AdaIN style MLP, batched over the bt folded batches.
        # (1/S of the spatial mean is folded into wa1t.)
        g_sum = jnp.sum(g3, axis=1)                                        # (bt, C)
        s1 = jnp.dot(g_sum.astype(cd), wa1t_ref[...],
                     preferred_element_type=jnp.float32) + ba1_ref[...]    # (bt, 2C)
        s1 = jnp.where(s1 > 0, s1, 0.2 * s1)                               # LeakyReLU(0.2)
        style = jnp.dot(s1.astype(cd), wa2t_ref[...],
                        preferred_element_type=jnp.float32) + ba2_ref[...]  # (bt, 2C)
        gamma = style[:, :c]            # vreg-aligned split when C % 128 == 0
        beta = style[:, c:]
        g3 = gamma[:, None, :] * g3 + beta[:, None, :]                     # f32

    out = jnp.where(g3 > 0, g3, 0.2 * g3)                                  # LeakyReLU(0.2)
    o_ref[...] = out.reshape(bt * s, c).astype(o_ref.dtype)


# ----------------------------- wrapper helpers ------------------------------

def _tensorcores_per_chip():
    """2 on v7x, 1 on v5e/v6e (and anything we cannot identify)."""
    try:
        kind = jax.devices()[0].device_kind.lower()
    except Exception:
        return 1
    return 2 if ("v7" in kind or "7x" in kind) else 1


def _vmem_capacity_bytes():
    try:
        return int(pltpu.get_tpu_info().vmem_capacity_bytes)
    except Exception:
        return 64 * 1024 * 1024      # v7x per-TC VMEM: the smallest in the fleet


def _vmem_limit_bytes():
    # Explicit scoped-VMEM limit (leave headroom below physical capacity).
    return int(min(0.75 * _vmem_capacity_bytes(), 96 * 1024 * 1024))


def _pick_block_b(B, S, C):
    """Generation-aware batch folding with an explicit VMEM cap."""
    # Grid length: 1 on single-TC chips (v5e/v6e); 2 on v7x only when the
    # per-step slab is big enough that the per-step overhead is amortized.
    grid_len = 1
    if _tensorcores_per_chip() >= 2 and B % 2 == 0:
        if (B // 2) * S * C >= _STEP_WORK_THRESHOLD:
            grid_len = 2

    # VMEM cap: double-buffered x/out/A_bd blocks plus weights must fit a
    # conservative slice of per-core VMEM (v7x is tightest at 64 MiB).
    budget = min(_vmem_capacity_bytes(), 64 * 1024 * 1024) // 3
    weight_bytes = 2 * ((C * C + C * 2 * C + 2 * C * 2 * C) * 2 + 5 * C * 4)

    def fits(bt):
        act = bt * S * C * (2 + 4)           # x (bf16) + out (f32) per buffer
        abd = (bt * S) ** 2 * 2              # block-diagonal A (bf16) per buffer
        return weight_bytes + 2 * (act + abd) <= budget

    for bt in range(B // grid_len, 0, -1):
        if B % bt == 0 and fits(bt):
            return bt
    return 1


# --------------------------------- wrappers ---------------------------------

def gcn_block_flat(x_flat, A, params, *, ada_in=ADA_IN, block_b=None,
                   compute_dtype=jnp.bfloat16):
    """Features-last GCNBlock: x_flat (B*S, C) -> (B*S, C) float32.

    Use this directly (keeping the (B*S, C) layout between blocks) when
    stacking several GCNBlocks; `gcn_block` adds the NCHW <-> flat transposes
    only at the PyTorch-shaped API boundary.
    """
    B, S, S2 = A.shape
    assert S == S2, "A must be (B, S, S)"
    BS, C = x_flat.shape
    assert BS == B * S, "x_flat must be (B*S, C)"
    # Sublane alignment: in-kernel (bt*S, C) <-> (bt, S, C) reshapes and the
    # per-batch row blocks are layout-free only when S is a sublane multiple.
    assert S % 8 == 0, "S must be a multiple of 8 (f32 sublane)"
    # (C % 128 == 0 keeps stores lane-dense and the gamma/beta split
    #  vreg-aligned; other C still compiles, just slower.)

    w1, b1, wa1, ba1, wa2, ba2 = (params[k] for k in
                                  ("w1", "b1", "wa1", "ba1", "wa2", "ba2"))

    # WSConv2d scales (kernel=1): sqrt(2 / (in_ch * 1 * 1))
    scale1 = math.sqrt(2.0 / C)          # proj (dim -> dim)
    scale_a1 = math.sqrt(2.0 / C)        # AdaIN mlp layer 1 (dim -> 2*dim)
    scale_a2 = math.sqrt(2.0 / (2 * C))  # AdaIN mlp layer 2 (2*dim -> 2*dim)

    cd = compute_dtype
    # Fold scales (and the AdaIN spatial-mean 1/S) into transposed weights.
    # bf16 weights/activations (MXU-native), f32 biases and accumulation.
    w1t = (w1.T * scale1).astype(cd)                         # (C, C)
    b1r = b1.reshape(1, C).astype(jnp.float32)
    wa1t = (wa1.T * (scale_a1 / S)).astype(cd)               # (C, 2C), 1/S folded
    ba1r = ba1.reshape(1, 2 * C).astype(jnp.float32)
    wa2t = (wa2.T * scale_a2).astype(cd)                     # (2C, 2C), kept whole
    ba2r = ba2.reshape(1, 2 * C).astype(jnp.float32)
    x_cd = x_flat.astype(cd)

    if block_b is None:
        block_b = _pick_block_b(B, S, C)
    assert B % block_b == 0, "B must be divisible by block_b"
    bt = block_b
    grid_b = B // bt

    # Block-diagonal adjacency per grid step, stored as a flat (B*S, bt*S)
    # slab so a plain 2-D BlockSpec addresses it.
    A_cd = A.astype(cd)
    if bt == 1:
        a_bd = A_cd.reshape(B * S, S)
    else:
        eye = jnp.eye(bt, dtype=cd)
        a_bd = jnp.einsum('gbij,bc->gbicj',
                          A_cd.reshape(grid_b, bt, S, S), eye,
                          ).reshape(B * S, bt * S)

    kernel = functools.partial(_gcn_block_kernel, bt=bt, s=S, ada_in=ada_in)

    # NOTE: with the generation-aware defaults grid_b is 1 (or 2 on v7x for
    # large slabs), so the constant-index weight blocks below are fetched at
    # most twice; if grid_b ever grows, pin them single-buffered
    # (pipeline_mode=pl.Buffered(1)) or preload them into scratch.
    out_flat = pl.pallas_call(
        kernel,
        out_shape=jax.ShapeDtypeStruct((B * S, C), jnp.float32),
        grid_spec=pltpu.PrefetchScalarGridSpec(
            num_scalar_prefetch=0,
            grid=(grid_b,),
            in_specs=[
                pl.BlockSpec((bt * S, C), lambda b: (b, 0)),          # x slab
                pl.BlockSpec((bt * S, bt * S), lambda b: (b, 0)),     # block-diag A
                pl.BlockSpec((C, C), lambda b: (0, 0)),               # w1^T (scaled)
                pl.BlockSpec((1, C), lambda b: (0, 0)),               # b1
                pl.BlockSpec((C, 2 * C), lambda b: (0, 0)),           # wa1^T (scaled/S)
                pl.BlockSpec((1, 2 * C), lambda b: (0, 0)),           # ba1
                pl.BlockSpec((2 * C, 2 * C), lambda b: (0, 0)),       # wa2^T (scaled)
                pl.BlockSpec((1, 2 * C), lambda b: (0, 0)),           # ba2
            ],
            out_specs=pl.BlockSpec((bt * S, C), lambda b: (b, 0)),
        ),
        compiler_params=pltpu.CompilerParams(
            dimension_semantics=("parallel",),
            vmem_limit_bytes=_vmem_limit_bytes()),
    )(x_cd, a_bd, w1t, b1r, wa1t, ba1r, wa2t, ba2r)

    return out_flat


def gcn_block(x_nchw, A, params, *, ada_in=ADA_IN, block_b=None,
              compute_dtype=jnp.bfloat16):
    """PyTorch-shaped API: x (B, C, S, 1) -> (B, C, S, 1)."""
    B, C, S, one = x_nchw.shape
    assert one == 1, "spec input is (B, C, S, 1)"
    x_flat = jnp.transpose(x_nchw[..., 0], (0, 2, 1)).reshape(B * S, C)
    out_flat = gcn_block_flat(x_flat, A, params, ada_in=ada_in,
                              block_b=block_b, compute_dtype=compute_dtype)
    return jnp.transpose(out_flat.reshape(B, S, C), (0, 2, 1))[..., None]


def gcn_block_ref(x_nchw, A, params, *, ada_in=ADA_IN,
                  compute_dtype=jnp.float32):
    """Pure-JAX reference matching the PyTorch forward (NCHW in / NCHW out).

    compute_dtype=float32 reproduces the PyTorch module (the scale / 1-over-S
    folding is a mathematically exact reordering); pass bfloat16 to mirror the
    kernel's mixed-precision cast points for a tight comparison.
    """
    B, C, S, _ = x_nchw.shape
    w1, b1, wa1, ba1, wa2, ba2 = (params[k] for k in
                                  ("w1", "b1", "wa1", "ba1", "wa2", "ba2"))
    scale1 = math.sqrt(2.0 / C)
    scale_a1 = math.sqrt(2.0 / C)
    scale_a2 = math.sqrt(2.0 / (2 * C))
    cd = compute_dtype

    xf = jnp.transpose(x_nchw[..., 0], (0, 2, 1))                      # (B, S, C)
    h = jnp.dot(xf.astype(cd), (w1.T * scale1).astype(cd),
                preferred_element_type=jnp.float32) + b1
    g = jnp.einsum('bij,bjc->bic', A.astype(cd), h.astype(cd),
                   preferred_element_type=jnp.float32)                 # (B, S, C)
    if ada_in:
        g_sum = g.sum(axis=1)                                          # (B, C)
        s1 = jnp.dot(g_sum.astype(cd), (wa1.T * (scale_a1 / S)).astype(cd),
                     preferred_element_type=jnp.float32) + ba1
        s1 = jnp.where(s1 > 0, s1, 0.2 * s1)
        style = jnp.dot(s1.astype(cd), (wa2.T * scale_a2).astype(cd),
                        preferred_element_type=jnp.float32) + ba2
        gamma, beta = style[:, :C], style[:, C:]
        g = gamma[:, None, :] * g + beta[:, None, :]
    out = jnp.where(g > 0, g, 0.2 * g)
    return jnp.transpose(out, (0, 2, 1))[..., None]                    # (B, C, S, 1)


if __name__ == "__main__":
    # PyTorch spec shapes: x (B, C, S, 1), A (B, S, S).
    # C=128 keeps every block lane-dense and the gamma/beta split vreg-aligned.
    B, C, S = 4, 128, 16

    key = jax.random.PRNGKey(0)
    kx, ka, kw1, kwa1, kwa2 = jax.random.split(key, 5)

    x = jax.random.normal(kx, (B, C, S, 1), dtype=jnp.float32)
    A = jax.random.normal(ka, (B, S, S), dtype=jnp.float32)

    # WSConv2d init: weight ~ N(0,1), bias = 0.
    params = {
        "w1": jax.random.normal(kw1, (C, C), dtype=jnp.float32),            # proj (dim -> dim)
        "b1": jnp.zeros((C,), dtype=jnp.float32),
        "wa1": jax.random.normal(kwa1, (2 * C, C), dtype=jnp.float32),      # AdaIN mlp layer 1
        "ba1": jnp.zeros((2 * C,), dtype=jnp.float32),
        "wa2": jax.random.normal(kwa2, (2 * C, 2 * C), dtype=jnp.float32),  # AdaIN mlp layer 2
        "ba2": jnp.zeros((2 * C,), dtype=jnp.float32),
    }

    out = jax.block_until_ready(gcn_block(x, A, params))
    # Compare against the reference evaluated with the same bf16 cast points
    # (bf16 MXU operands, f32 accumulation) so the check stays tight.
    ref = jax.block_until_ready(
        gcn_block_ref(x, A, params, compute_dtype=jnp.bfloat16))

    assert out.shape == (B, C, S, 1)
    assert jnp.allclose(out, ref, atol=1e-2, rtol=1e-2), "kernel mismatch vs reference"

    print("KERNEL_OK")
</pallas_src>

<mosaic_0001>
module attributes {stable_mosaic.version = 11 : i64} {
  func.func @_gcn_block_kernel(%arg0: i32, %arg1: memref<64x128xbf16, #tpu.memory_space<vmem>>, %arg2: memref<64x64xbf16, #tpu.memory_space<vmem>>, %arg3: memref<128x128xbf16, #tpu.memory_space<vmem>>, %arg4: memref<1x128xf32, #tpu.memory_space<vmem>>, %arg5: memref<128x256xbf16, #tpu.memory_space<vmem>>, %arg6: memref<1x256xf32, #tpu.memory_space<vmem>>, %arg7: memref<256x256xbf16, #tpu.memory_space<vmem>>, %arg8: memref<1x256xf32, #tpu.memory_space<vmem>>, %arg9: memref<64x128xf32, #tpu.memory_space<vmem>>) attributes {dimension_semantics = [#tpu.dimension_semantics<parallel>], iteration_bounds = array<i64: 1>, scalar_prefetch = 0 : i64, scratch_operands = 0 : i64, tpu.core_type = #tpu.core_type<tc>, window_params = [{transform_indices = @transform_0, window_bounds = array<i64: 64, 128>}, {transform_indices = @transform_1, window_bounds = array<i64: 64, 64>}, {pipeline_mode = #tpu.pipeline_mode<synchronous>, transform_indices = @transform_2, window_bounds = array<i64: 128, 128>}, {pipeline_mode = #tpu.pipeline_mode<synchronous>, transform_indices = @transform_3, window_bounds = array<i64: 1, 128>}, {pipeline_mode = #tpu.pipeline_mode<synchronous>, transform_indices = @transform_4, window_bounds = array<i64: 128, 256>}, {pipeline_mode = #tpu.pipeline_mode<synchronous>, transform_indices = @transform_5, window_bounds = array<i64: 1, 256>}, {pipeline_mode = #tpu.pipeline_mode<synchronous>, transform_indices = @transform_6, window_bounds = array<i64: 256, 256>}, {pipeline_mode = #tpu.pipeline_mode<synchronous>, transform_indices = @transform_7, window_bounds = array<i64: 1, 256>}, {transform_indices = @transform_8, window_bounds = array<i64: 64, 128>}]} {
    %c0 = arith.constant 0 : index
    %c0_0 = arith.constant 0 : index
    %0 = vector.load %arg1[%c0, %c0_0] : memref<64x128xbf16, #tpu.memory_space<vmem>>, vector<64x128xbf16>
    %c0_1 = arith.constant 0 : index
    %c0_2 = arith.constant 0 : index
    %1 = vector.load %arg3[%c0_1, %c0_2] : memref<128x128xbf16, #tpu.memory_space<vmem>>, vector<128x128xbf16>
    %cst = arith.constant dense<0.000000e+00> : vector<64x128xf32>
    %2 = tpu.matmul %0, %1, %cst {dimension_numbers = #tpu.dot_dimension_numbers<[1], [0], [0], [1], [0, 0, 1, 1], [], []>} : vector<64x128xbf16>, vector<128x128xbf16>, vector<64x128xf32> -> vector<64x128xf32>
    %c0_3 = arith.constant 0 : index
    %c0_4 = arith.constant 0 : index
    %3 = vector.load %arg4[%c0_3, %c0_4] : memref<1x128xf32, #tpu.memory_space<vmem>>, vector<1x128xf32>
    %4 = vector.broadcast %3 : vector<1x128xf32> to vector<64x128xf32>
    %5 = arith.addf %2, %4 : vector<64x128xf32>
    %c0_5 = arith.constant 0 : index
    %c0_6 = arith.constant 0 : index
    %6 = vector.load %arg2[%c0_5, %c0_6] : memref<64x64xbf16, #tpu.memory_space<vmem>>, vector<64x64xbf16>
    %7 = arith.truncf %5 : vector<64x128xf32> to vector<64x128xbf16>
    %cst_7 = arith.constant dense<0.000000e+00> : vector<64x128xf32>
    %8 = tpu.matmul %6, %7, %cst_7 {dimension_numbers = #tpu.dot_dimension_numbers<[1], [0], [0], [1], [0, 0, 1, 1], [], []>} : vector<64x64xbf16>, vector<64x128xbf16>, vector<64x128xf32> -> vector<64x128xf32>
    %9 = vector.shape_cast %8 : vector<64x128xf32> to vector<4x16x128xf32>
    %cst_8 = arith.constant dense<0.000000e+00> : vector<4x128xf32>
    %10 = vector.multi_reduction <add>, %9, %cst_8 [1] : vector<4x16x128xf32> to vector<4x128xf32>
    %11 = arith.truncf %10 : vector<4x128xf32> to vector<4x128xbf16>
    %c0_9 = arith.constant 0 : index
    %c0_10 = arith.constant 0 : index
    %12 = vector.load %arg5[%c0_9, %c0_10] : memref<128x256xbf16, #tpu.memory_space<vmem>>, vector<128x256xbf16>
    %cst_11 = arith.constant dense<0.000000e+00> : vector<4x256xf32>
    %13 = tpu.matmul %11, %12, %cst_11 {dimension_numbers = #tpu.dot_dimension_numbers<[1], [0], [0], [1], [0, 0, 1, 1], [], []>} : vector<4x128xbf16>, vector<128x256xbf16>, vector<4x256xf32> -> vector<4x256xf32>
    %c0_12 = arith.constant 0 : index
    %c0_13 = arith.constant 0 : index
    %14 = vector.load %arg6[%c0_12, %c0_13] : memref<1x256xf32, #tpu.memory_space<vmem>>, vector<1x256xf32>
    %15 = vector.broadcast %14 : vector<1x256xf32> to vector<4x256xf32>
    %16 = arith.addf %13, %15 : vector<4x256xf32>
    %cst_14 = arith.constant 0.000000e+00 : f32
    %17 = vector.broadcast %cst_14 : f32 to vector<4x256xf32>
    %18 = arith.cmpf ogt, %16, %17 : vector<4x256xf32>
    %cst_15 = arith.constant 2.000000e-01 : f32
    %19 = vector.broadcast %cst_15 : f32 to vector<4x256xf32>
    %20 = arith.mulf %19, %16 : vector<4x256xf32>
    %21 = arith.select %18, %16, %20 : vector<4x256xi1>, vector<4x256xf32>
    %22 = arith.truncf %21 : vector<4x256xf32> to vector<4x256xbf16>
    %c0_16 = arith.constant 0 : index
    %c0_17 = arith.constant 0 : index
    %23 = vector.load %arg7[%c0_16, %c0_17] : memref<256x256xbf16, #tpu.memory_space<vmem>>, vector<256x256xbf16>
    %cst_18 = arith.constant dense<0.000000e+00> : vector<4x256xf32>
    %24 = tpu.matmul %22, %23, %cst_18 {dimension_numbers = #tpu.dot_dimension_numbers<[1], [0], [0], [1], [0, 0, 1, 1], [], []>} : vector<4x256xbf16>, vector<256x256xbf16>, vector<4x256xf32> -> vector<4x256xf32>
    %c0_19 = arith.constant 0 : index
    %c0_20 = arith.constant 0 : index
    %25 = vector.load %arg8[%c0_19, %c0_20] : memref<1x256xf32, #tpu.memory_space<vmem>>, vector<1x256xf32>
    %26 = vector.broadcast %25 : vector<1x256xf32> to vector<4x256xf32>
    %27 = arith.addf %24, %26 : vector<4x256xf32>
    %28 = vector.extract_strided_slice %27 {offsets = [0, 0], sizes = [4, 128], strides = [1, 1]} : vector<4x256xf32> to vector<4x128xf32>
    %29 = vector.extract_strided_slice %27 {offsets = [0, 128], sizes = [4, 128], strides = [1, 1]} : vector<4x256xf32> to vector<4x128xf32>
    %30 = vector.shape_cast %28 : vector<4x128xf32> to vector<4x1x128xf32>
    %31 = vector.broadcast %30 : vector<4x1x128xf32> to vector<4x16x128xf32>
    %32 = arith.mulf %31, %9 : vector<4x16x128xf32>
    %33 = vector.shape_cast %29 : vector<4x128xf32> to vector<4x1x128xf32>
    %34 = vector.broadcast %33 : vector<4x1x128xf32> to vector<4x16x128xf32>
    %35 = arith.addf %32, %34 : vector<4x16x128xf32>
    %cst_21 = arith.constant 0.000000e+00 : f32
    %36 = vector.broadcast %cst_21 : f32 to vector<4x16x128xf32>
    %37 = arith.cmpf ogt, %35, %36 : vector<4x16x128xf32>
    %cst_22 = arith.constant 2.000000e-01 : f32
    %38 = vector.broadcast %cst_22 : f32 to vector<4x16x128xf32>
    %39 = arith.mulf %38, %35 : vector<4x16x128xf32>
    %40 = arith.select %37, %35, %39 : vector<4x16x128xi1>, vector<4x16x128xf32>
    %41 = vector.shape_cast %40 : vector<4x16x128xf32> to vector<64x128xf32>
    %c0_23 = arith.constant 0 : index
    %c0_24 = arith.constant 0 : index
    %42 = vector.load %arg9[%c0_23, %c0_24] : memref<64x128xf32, #tpu.memory_space<vmem>>, vector<64x128xf32>
    tpu.vector_store %arg9[%c0_23, %c0_24], %41 {strides = array<i32>} : memref<64x128xf32, #tpu.memory_space<vmem>>, vector<64x128xf32>,
    return
  }
  func.func @transform_0(%arg0: i32) -> (i32, i32) {
    %c0_i32 = arith.constant 0 : i32
    %c0_i32_0 = arith.constant 0 : i32
    return %arg0, %c0_i32 : i32, i32
  }
  func.func @transform_1(%arg0: i32) -> (i32, i32) {
    %c0_i32 = arith.constant 0 : i32
    %c0_i32_0 = arith.constant 0 : i32
    return %arg0, %c0_i32 : i32, i32
  }
  func.func @transform_2(%arg0: i32) -> (i32, i32) {
    %c0_i32 = arith.constant 0 : i32
    %c0_i32_0 = arith.constant 0 : i32
    %c0_i32_1 = arith.constant 0 : i32
    return %c0_i32, %c0_i32_0 : i32, i32
  }
  func.func @transform_3(%arg0: i32) -> (i32, i32) {
    %c0_i32 = arith.constant 0 : i32
    %c0_i32_0 = arith.constant 0 : i32
    %c0_i32_1 = arith.constant 0 : i32
    return %c0_i32, %c0_i32_0 : i32, i32
  }
  func.func @transform_4(%arg0: i32) -> (i32, i32) {
    %c0_i32 = arith.constant 0 : i32
    %c0_i32_0 = arith.constant 0 : i32
    %c0_i32_1 = arith.constant 0 : i32
    return %c0_i32, %c0_i32_0 : i32, i32
  }
  func.func @transform_5(%arg0: i32) -> (i32, i32) {
    %c0_i32 = arith.constant 0 : i32
    %c0_i32_0 = arith.constant 0 : i32
    %c0_i32_1 = arith.constant 0 : i32
    return %c0_i32, %c0_i32_0 : i32, i32
  }
  func.func @transform_6(%arg0: i32) -> (i32, i32) {
    %c0_i32 = arith.constant 0 : i32
    %c0_i32_0 = arith.constant 0 : i32
    %c0_i32_1 = arith.constant 0 : i32
    return %c0_i32, %c0_i32_0 : i32, i32
  }
  func.func @transform_7(%arg0: i32) -> (i32, i32) {
    %c0_i32 = arith.constant 0 : i32
    %c0_i32_0 = arith.constant 0 : i32
    %c0_i32_1 = arith.constant 0 : i32
    return %c0_i32, %c0_i32_0 : i32, i32
  }
  func.func @transform_8(%arg0: i32) -> (i32, i32) {
    %c0_i32 = arith.constant 0 : i32
    %c0_i32_0 = arith.constant 0 : i32
    return %arg0, %c0_i32 : i32, i32
  }
}

</mosaic_0001>

<bundles_post_ra>
// kernel: tpu_custom_call.1
= control target key start
LH: loop header
LB: loop body
LE: loop exit
PB: predicated region body
PF: predicated region fallthrough
CT: control target
= control target key end

     0   :  { %13 = vsyncpa [#allocation3], 0  ;;  %s1496_s0 = inlined_call_operand.hbm [shape: bf16[64,128], index: 0, kind: input, shape index: {}]   ;;  %s1497_s1 = inlined_call_operand.hbm [shape: bf16[64,64], index: 1, kind: input, shape index: {}]   ;;  %s1498_s2 = inlined_call_operand.hbm [shape: bf16[128,128], index: 2, kind: input, shape index: {}]   ;;  %s1499_s3 = inlined_call_operand.vmem [shape: f32[1,128], index: 3, kind: input, shape index: {}]   ;;  %s1500_s4 = inlined_call_operand.hbm [shape: bf16[128,256], index: 4, kind: input, shape index: {}]   ;;  %s1501_s5 = inlined_call_operand.vmem [shape: f32[1,256], index: 5, kind: input, shape index: {}]   ;;  %s1502_s6 = inlined_call_operand.hbm [shape: bf16[256,256], index: 6, kind: input, shape index: {}]   ;;  %s1503_s7 = inlined_call_operand.vmem [shape: f32[1,256], index: 7, kind: input, shape index: {}]   ;;  %s1504_s8 = inlined_call_operand.hbm [shape: f32[64,128], index: 8, kind: output, shape index: {}]  }
   0x1   :  { %14 = vsyncpa [#allocation6], 0 }
   0x2   :  { %15 = vsyncpa [#allocation9], 0 }
   0x3   :  { %16 = vsyncpa [#allocation4], 0  ;;  %s1341_s27 = smov [#allocation5]   ;;  %s1342_s29 = smov [#allocation8]  }
   0x4   :  { %s34_s28 = sshll.u32 %s1341_s27, 4  ;;  %s60_s30 = sshll.u32 %s1342_s29, 4  ;;  %s35_s28 = int_to_ptr.vmem [resolvable:$true] %s34_s28  ;;  %s61_s30 = int_to_ptr.vmem [resolvable:$true] %s60_s30 }
   0x5   :  { %s1221_s9 = scalar_lea.vmem %s35_s28, 512  ;;  %p1226_p1 = scmp.lt.s32.totalorder %s35_s28, %s35_s28 }
   0x6   :  { %p1222_p0 = scmp.ne.s32.totalorder %s35_s28, %s1221_s9  ;;  %p1227_p2 = scmp.lt.s32.totalorder %s1221_s9, %s1221_s9 }
   0x8   :  { %p1228_p3 = por %p1227_p2, %p1226_p1 }
   0xa   :  { %p1229_p4 = pnand %p1228_p3, %p1222_p0 }
   0xc   :  { %1232 = shalt.err (!%p1229_p4)
}
   0xd   :  { %s1343_s10 = smov 64   ;;  %s1344_s11 = smov 4  }
   0xe   :  { %40 = dma.hbm_to_vmem [thread:$0]  %s1497_s1, 512, %s35_s28, [#allocation6], %s1343_s10, %s1343_s10, %s1344_s11  }
   0xf   :  { %s1241_s14 = scalar_lea.vmem %s61_s30, 2048  ;;  %p1246_p6 = scmp.lt.s32.totalorder %s61_s30, %s61_s30 }
  0x10   :  { %p1242_p5 = scmp.ne.s32.totalorder %s61_s30, %s1241_s14  ;;  %p1247_p7 = scmp.lt.s32.totalorder %s1241_s14, %s1241_s14 }
  0x12   :  { %p1248_p8 = por %p1247_p7, %p1246_p6 }
  0x14   :  { %p1249_p9 = pnand %p1248_p8, %p1242_p5 }
  0x16   :  { %1252 = shalt.err (!%p1249_p9)
}
  0x17   :  { %s1345_s15 = smov 128   ;;  %s1346_s16 = smov 8  }
  0x18   :  { %66 = dma.hbm_to_vmem [thread:$0]  %s1500_s4, 2048, %s61_s30, [#allocation9], %s1345_s15, %s1345_s15, %s1346_s16  }
  0x19   :  { %s1347_s19 = smov [#allocation2]   ;;  %s1348_s21 = smov [#allocation7]  }
  0x1a   :  { %s22_s20 = sshll.u32 %s1347_s19, 4  ;;  %s46_s1 = sshll.u32 %s1348_s21, 4  ;;  %s23_s20 = int_to_ptr.vmem [resolvable:$true] %s22_s20  ;;  %s47_s1 = int_to_ptr.vmem [resolvable:$true] %s46_s1 }
  0x1b   :  { %s1261_s22 = scalar_lea.vmem %s23_s20, 512  ;;  %p1266_p11 = scmp.lt.s32.totalorder %s23_s20, %s23_s20 }
  0x1c   :  { %p1262_p10 = scmp.ne.s32.totalorder %s23_s20, %s1261_s22  ;;  %p1267_p12 = scmp.lt.s32.totalorder %s1261_s22, %s1261_s22 }
  0x1e   :  { %p1268_p13 = por %p1267_p12, %p1266_p11 }
  0x20   :  { %p1269_p0 = pnand %p1268_p13, %p1262_p10 }
  0x22   :  { %1272 = shalt.err (!%p1269_p0)
}
  0x23   :  { %28 = dma.hbm_to_vmem [thread:$0]  %s1496_s0, 512, %s23_s20, [#allocation3], %s1343_s10, %s1343_s10, %s1344_s11  }
  0x24   :  { %s1281_s4 = scalar_lea.vmem %s47_s1, 1024  ;;  %p1286_p2 = scmp.lt.s32.totalorder %s47_s1, %s47_s1 }
  0x25   :  { %p1282_p1 = scmp.ne.s32.totalorder %s47_s1, %s1281_s4  ;;  %p1287_p3 = scmp.lt.s32.totalorder %s1281_s4, %s1281_s4 }
  0x27   :  { %p1288_p4 = por %p1287_p3, %p1286_p2 }
  0x29   :  { %p1289_p5 = pnand %p1288_p4, %p1282_p1 }
  0x2b   :  { %1292 = shalt.err (!%p1289_p5)
}
  0x2c   :  { %52 = dma.hbm_to_vmem [thread:$0]  %s1498_s2, 1024, %s47_s1, [#allocation6], %s1343_s10, %s1343_s10, %s1344_s11  }
  0x2d   :  { %s1349_s27 = smov [#allocation10]  }
  0x2e   :  { %s74_s28 = sshll.u32 %s1349_s27, 4  ;;  %s75_s28 = int_to_ptr.vmem [resolvable:$true] %s74_s28 }
  0x2f   :  { %s1301_s29 = scalar_lea.vmem %s75_s28, 4096  ;;  %p1306_p7 = scmp.lt.s32.totalorder %s75_s28, %s75_s28 }
  0x30   :  { %p1302_p6 = scmp.ne.s32.totalorder %s75_s28, %s1301_s29  ;;  %p1307_p8 = scmp.lt.s32.totalorder %s1301_s29, %s1301_s29 }
  0x32   :  { %p1308_p9 = por %p1307_p8, %p1306_p7 }
  0x34   :  { %p1309_p10 = pnand %p1308_p9, %p1302_p6 }
  0x36   :  { %1312 = shalt.err (!%p1309_p10)
}
  0x37   :  { %80 = dma.hbm_to_vmem [thread:$0]  %s1502_s6, 4096, %s75_s28, [#allocation9], %s1345_s15, %s1345_s15, %s1346_s16  }
  0x38   :  { %1333 = dma.done.wait [#allocation3], 512  }
  0x39   :  { %1334 = vsyncadd [#allocation3], 4294966784 }
  0x3a   :  { %1335 = dma.done.wait [#allocation6], 1536  }
  0x3b   :  { %1336 = vsyncadd [#allocation6], 4294965760 }
  0x3c   :  { %1337 = dma.done.wait [#allocation9], 6144  }
  0x3d   :  { %1338 = vsyncadd [#allocation9], 4294961152  ;;  %v1125_v0 = vld [vmem:[#allocation7 + $0x38] sm:$0xff]   ;;  %v1126_v1 = vld [vmem:[#allocation7 + $0x30] sm:$0xff]   ;;  %vm299_vm0 = vcmask 523264   ;;  %v1350_v53 = vmov 0  }
  0x3e   :  { %1073 = vmatprep.subr.bf16.mxu1 %v1125_v0  ;;  %v1127_v2 = vld [vmem:[#allocation7 + $0x28] sm:$0xff]   ;;  %v1128_v3 = vld [vmem:[#allocation7 + $0x20] sm:$0xff]   ;;  %v1129_v5 = vld [vmem:[#allocation7 + $0x18] sm:$0xff]   ;;  %vm445_vm1 = vcmask 1041409   ;;  %vm447_vm2 = vcmask 1042434   ;;  %vm449_vm3 = vcmask 1043459  }
  0x3f   :  { %1074 = vmatpush3.bf16.msra.mxu1 %v1125_v0  ;;  %v1133_v4 = vld [vmem:[#allocation2] sm:$0xff]   ;;  %v1130_v6 = vld [vmem:[#allocation7 + $0x10] sm:$0xff]   ;;  %v1131_v7 = vld [vmem:[#allocation7 + $0x8] sm:$0xff]  }
  0x40   :  { %1075 = vmatprep.subr.bf16.mxu1 %v1126_v1  ;;  %1089 = vmatprep.mubr.bf16.mxu1 %v1133_v4  ;;  %v1132_v8 = vld [vmem:[#allocation7] sm:$0xff]   ;;  %v1134_v9 = vld [vmem:[#allocation2 + $0x8] sm:$0xff]   ;;  %v1135_v10 = vld [vmem:[#allocation2 + $0x10] sm:$0xff]  }
  0x41   :  { %v1136_v11 = vld [vmem:[#allocation2 + $0x18] sm:$0xff]   ;;  %v1137_v12 = vld [vmem:[#allocation5] sm:$0xff]   ;;  %v1138_v34 = vld [vmem:[#allocation5 + $0x8] sm:$0xff]  }
  0x42   :  { %v984_v19 = vld [vmem:[%s1499_s3] ss:$0 sm:$0xff]  ;;  %v1139_v35 = vld [vmem:[#allocation5 + $0x10] sm:$0xff]   ;;  %v1140_v36 = vld [vmem:[#allocation5 + $0x18] sm:$0xff]  }
  0x43   :  { %1076 = vmatpush3.bf16.msra.mxu1 %v1126_v1  ;;  %v1143_v37 = vld [vmem:[#allocation8 + $0x74] ss:$8 sps:$4 sm:$0xff]   ;;  %v1141_v38 = vld [vmem:[#allocation8 + $0x70] ss:$8 sps:$4 sm:$0xff]   ;;  %v1146_v39 = vld [vmem:[#allocation8 + $0x64] ss:$8 sps:$4 sm:$0xff]  }
  0x44   :  { %1077 = vmatprep.subr.bf16.mxu1 %v1127_v2  ;;  %v1144_v40 = vld [vmem:[#allocation8 + $0x60] ss:$8 sps:$4 sm:$0xff]   ;;  %v1149_v41 = vld [vmem:[#allocation8 + $0x54] ss:$8 sps:$4 sm:$0xff]   ;;  %v1147_v42 = vld [vmem:[#allocation8 + $0x50] ss:$8 sps:$4 sm:$0xff]  }
  0x45   :  { %v1152_v43 = vld [vmem:[#allocation8 + $0x44] ss:$8 sps:$4 sm:$0xff]   ;;  %v1150_v44 = vld [vmem:[#allocation8 + $0x40] ss:$8 sps:$4 sm:$0xff]   ;;  %v1155_v45 = vld [vmem:[#allocation8 + $0x34] ss:$8 sps:$4 sm:$0xff]  }
  0x46   :  { %v1153_v46 = vld [vmem:[#allocation8 + $0x30] ss:$8 sps:$4 sm:$0xff]   ;;  %v1158_v47 = vld [vmem:[#allocation8 + $0x24] ss:$8 sps:$4 sm:$0xff]   ;;  %v1156_v48 = vld [vmem:[#allocation8 + $0x20] ss:$8 sps:$4 sm:$0xff]  }
  0x47   :  { %1078 = vmatpush3.bf16.msra.mxu1 %v1127_v2  ;;  %v1161_v49 = vld [vmem:[#allocation8 + $0x14] ss:$8 sps:$4 sm:$0xff]   ;;  %v1159_v50 = vld [vmem:[#allocation8 + $0x10] ss:$8 sps:$4 sm:$0xff]   ;;  %v1164_v51 = vld [vmem:[#allocation8 + $0x4] ss:$8 sps:$4 sm:$0xff]  }
  0x48   :  { %1079 = vmatprep.subr.bf16.mxu1 %v1128_v3  ;;  %v1162_v52 = vld [vmem:[#allocation8] ss:$8 sps:$4 sm:$0xff]   ;;  %v1165_v54 = vld [vmem:[#allocation10 + $0x74] ss:$8 sps:$4 sm:$0xff]   ;;  %v1167_v55 = vld [vmem:[#allocation10 + $0x70] ss:$8 sps:$4 sm:$0xff]  }
  0x49   :  { %v1168_v56 = vld [vmem:[#allocation10 + $0x64] ss:$8 sps:$4 sm:$0xff]   ;;  %786 = vmatprep.subr.bf16.mxu0 %v1165_v54  ;;  %v1170_v57 = vld [vmem:[#allocation10 + $0x60] ss:$8 sps:$4 sm:$0xff]   ;;  %v1171_v58 = vld [vmem:[#allocation10 + $0x54] ss:$8 sps:$4 sm:$0xff]  }
  0x4a   :  { %787 = vmatpush1.bf16.msra.mxu0 %v1167_v55  ;;  %v1173_v59 = vld [vmem:[#allocation10 + $0x50] ss:$8 sps:$4 sm:$0xff]   ;;  %v1174_v60 = vld [vmem:[#allocation10 + $0x44] ss:$8 sps:$4 sm:$0xff]   ;;  %v1176_v61 = vld [vmem:[#allocation10 + $0x40] ss:$8 sps:$4 sm:$0xff]  }
  0x4b   :  { %1080 = vmatpush3.bf16.msra.mxu1 %v1128_v3  ;;  %788 = vmatprep.subr.bf16.mxu0 %v1168_v56  ;;  %v1177_v62 = vld [vmem:[#allocation10 + $0x34] ss:$8 sps:$4 sm:$0xff]   ;;  %v1179_v63 = vld [vmem:[#allocation10 + $0x30] ss:$8 sps:$4 sm:$0xff]   ;;  %v1180_v0 = vld [vmem:[#allocation10 + $0x24] ss:$8 sps:$4 sm:$0xff]  }
  0x4c   :  { %1081 = vmatprep.subr.bf16.mxu1 %v1129_v5  ;;  %v1182_v1 = vld [vmem:[#allocation10 + $0x20] ss:$8 sps:$4 sm:$0xff]   ;;  %v1183_v2 = vld [vmem:[#allocation10 + $0x14] ss:$8 sps:$4 sm:$0xff]   ;;  %v1185_v3 = vld [vmem:[#allocation10 + $0x10] ss:$8 sps:$4 sm:$0xff]  }
  0x4d   :  { %v1186_v4 = vld [vmem:[#allocation10 + $0x4] ss:$8 sps:$4 sm:$0xff]  }
  0x4e   :  { %789 = vmatpush1.bf16.msra.mxu0 %v1170_v57 }
  0x4f   :  { %1082 = vmatpush3.bf16.msra.mxu1 %v1129_v5  ;;  %790 = vmatprep.subr.bf16.mxu0 %v1171_v58  ;;  %v1188_v5 = vld [vmem:[#allocation10] ss:$8 sps:$4 sm:$0xff]  }
  0x50   :  { %1083 = vmatprep.subr.bf16.mxu1 %v1130_v6 }
  0x52   :  { %791 = vmatpush1.bf16.msra.mxu0 %v1173_v59 }
  0x53   :  { %1084 = vmatpush3.bf16.msra.mxu1 %v1130_v6  ;;  %792 = vmatprep.subr.bf16.mxu0 %v1174_v60  ;;  %v1189_v6 = vld [vmem:[#allocation10 + $0xf4] ss:$8 sps:$4 sm:$0xff]  }
  0x54   :  { %1085 = vmatprep.subr.bf16.mxu1 %v1131_v7 }
  0x56   :  { %793 = vmatpush1.bf16.msra.mxu0 %v1176_v61 }
  0x57   :  { %1086 = vmatpush3.bf16.msra.mxu1 %v1131_v7  ;;  %794 = vmatprep.subr.bf16.mxu0 %v1177_v62  ;;  %v1191_v7 = vld [vmem:[#allocation10 + $0xf0] ss:$8 sps:$4 sm:$0xff]  }
  0x58   :  { %1087 = vmatprep.subr.bf16.mxu1 %v1132_v8 }
  0x5a   :  { %795 = vmatpush1.bf16.msra.mxu0 %v1179_v63 }
  0x5b   :  { %1088 = vmatpush3.bf16.msra.mxu1 %v1132_v8  ;;  %796 = vmatprep.subr.bf16.mxu0 %v1180_v0  ;;  %v1192_v8 = vld [vmem:[#allocation10 + $0xe4] ss:$8 sps:$4 sm:$0xff]  }
  0x5e   :  { %1090 = vmatmul.mubr.bf16.vlgmr.msra.gmra.mxu1 %v1134_v9  ;;  %797 = vmatpush1.bf16.msra.mxu0 %v1182_v1  ;;  %v1194_v9 = vld [vmem:[#allocation10 + $0xe0] ss:$8 sps:$4 sm:$0xff]  }
  0x5f   :  { %1093 = vmatprep.mubr.bf16.mxu1 %v1135_v10  ;;  %798 = vmatprep.subr.bf16.mxu0 %v1183_v2  ;;  %v1195_v10 = vld [vmem:[#allocation10 + $0xd4] ss:$8 sps:$4 sm:$0xff]   ;;  %v1206_v1 = vld [vmem:[#allocation10 + $0xa0] ss:$8 sps:$4 sm:$0xff]  }
  0x60   :  { %v1207_v2 = vld [vmem:[#allocation10 + $0x94] ss:$8 sps:$4 sm:$0xff]  }
  0x62   :  { %799 = vmatpush1.bf16.msra.mxu0 %v1185_v3  ;;  %v1209_v3 = vld [vmem:[#allocation10 + $0x90] ss:$8 sps:$4 sm:$0xff]  }
  0x63   :  { %800 = vmatprep.subr.bf16.mxu0 %v1186_v4  ;;  %v1210_v4 = vld [vmem:[#allocation10 + $0x84] ss:$8 sps:$4 sm:$0xff]  }
  0x66   :  { %1094 = vmatmul.mubr.bf16.gmra.mxu1 %v1136_v11  ;;  %801 = vmatpush1.bf16.msra.mxu0 %v1188_v5  ;;  %v1197_v11 = vld [vmem:[#allocation10 + $0xd0] ss:$8 sps:$4 sm:$0xff]   ;;  %v1212_v5 = vld [vmem:[#allocation10 + $0x80] ss:$8 sps:$4 sm:$0xff]  }
  0x67   :  { %1105 = vmatprep.mubr.msk.bf16.mxu1 %vm299_vm0, %v1137_v12  ;;  %802 = vmatprep.subr.bf16.mxu0 %v1189_v6  ;;  %v1198_v12 = vld [vmem:[#allocation10 + $0xc4] ss:$8 sps:$4 sm:$0xff]   ;;  %v427_v6 = vlaneseq }
  0x6a   :  { %803 = vmatpush2.bf16.msra.mxu0 %v1191_v7  ;;  %v428_v7 = vshrl.u32 %v427_v6, 7 }
  0x6b   :  { %804 = vmatprep.subr.bf16.mxu0 %v1192_v8 }
  0x6c   :  { %v1459_v8 = vsub.s32 0, %v428_v7 }
  0x6e   :  { %805 = vmatpush2.bf16.msra.mxu0 %v1194_v9  ;;  %v425_v9 = vld [vmem:[%s1501_s5] sm:$0x3] }
  0x6f   :  { %806 = vmatprep.subr.bf16.mxu0 %v1195_v10  ;;  %v433_v10 = vsub.s32 1, %v428_v7 }
  0x72   :  { %807 = vmatpush2.bf16.msra.mxu0 %v1197_v11  ;;  %v430_v11 = vrot.slane %v425_v9, %v1459_v8 }
  0x73   :  { %808 = vmatprep.subr.bf16.mxu0 %v1198_v12  ;;  %v434_v12 = vrot.slane %v425_v9, %v433_v10 }
 0x11e   :  { %v1091_v13 = vpop.f32.mrf.mxu1 }
 0x11f   :  { %v245_v29 = vadd.f32 %v1091_v13, %v984_v19  ;;  %v1200_v13 = vld [vmem:[#allocation10 + $0xc0] ss:$8 sps:$4 sm:$0xff]  }
 0x120   :  { %v236_v14 = vpop.f32.mrf.mxu1  ;;  %809 = vmatpush2.bf16.msra.mxu0 %v1200_v13 }
 0x121   :  { %v237_v32 = vadd.f32 %v984_v19, %v236_v14  ;;  %v1201_v14 = vld [vmem:[#allocation10 + $0xb4] ss:$8 sps:$4 sm:$0xff]  }
 0x122   :  { %v1092_v15 = vpop.f32.mrf.mxu1  ;;  %810 = vmatprep.subr.bf16.mxu0 %v1201_v14 }
 0x123   :  { %v248_v27 = vadd.f32 %v1092_v15, %v984_v19  ;;  %v1203_v15 = vld [vmem:[#allocation10 + $0xb0] ss:$8 sps:$4 sm:$0xff]  }
 0x124   :  { %v239_v16 = vpop.f32.mrf.mxu1  ;;  %811 = vmatpush2.bf16.msra.mxu0 %v1203_v15 }
 0x125   :  { %v276_v30 = vpack.c.bf16 %v248_v27, %v245_v29  ;;  %v240_v31 = vadd.f32 %v984_v19, %v239_v16  ;;  %v1204_v16 = vld [vmem:[#allocation10 + $0xa4] ss:$8 sps:$4 sm:$0xff]  }
 0x126   :  { %v1095_v17 = vpop.f32.mrf.mxu1  ;;  %812 = vmatprep.subr.bf16.mxu0 %v1204_v16 }
 0x127   :  { %v261_v21 = vadd.f32 %v1095_v17, %v984_v19  ;;  %v275_v33 = vpack.c.bf16 %v240_v31, %v237_v32 }
 0x128   :  { %v252_v18 = vpop.f32.mrf.mxu1  ;;  %813 = vmatpush2.bf16.msra.mxu0 %v1206_v1 }
 0x129   :  { %v253_v24 = vadd.f32 %v984_v19, %v252_v18  ;;  %814 = vmatprep.subr.bf16.mxu0 %v1207_v2 }
 0x12a   :  { %v1096_v20 = vpop.f32.mrf.mxu1 }
 0x12b   :  { %v264_v22 = vadd.f32 %v1096_v20, %v984_v19 }
 0x12c   :  { %v255_v23 = vpop.f32.mrf.mxu1  ;;  %815 = vmatpush2.bf16.msra.mxu0 %v1209_v3 }
 0x12d   :  { %v278_v25 = vpack.c.bf16 %v264_v22, %v261_v21  ;;  %v256_v26 = vadd.f32 %v984_v19, %v255_v23  ;;  %816 = vmatprep.subr.bf16.mxu0 %v1210_v4 }
 0x12f   :  { %v277_v28 = vpack.c.bf16 %v256_v26, %v253_v24  ;;  %1097 = vmatprep.subr.bf16.mxu1 %v278_v25 }
 0x130   :  { %1098 = vmatpush3.bf16.msra.mxu1 %v278_v25  ;;  %817 = vmatpush2.bf16.msra.mxu0 %v1212_v5 }
 0x131   :  { %1099 = vmatprep.subr.bf16.mxu1 %v277_v28 }
 0x134   :  { %1100 = vmatpush3.bf16.msra.mxu1 %v277_v28 }
 0x135   :  { %1101 = vmatprep.subr.bf16.mxu1 %v276_v30 }
 0x138   :  { %1102 = vmatpush3.bf16.msra.mxu1 %v276_v30 }
 0x139   :  { %1103 = vmatprep.subr.bf16.mxu1 %v275_v33 }
 0x13c   :  { %1104 = vmatpush3.bf16.msra.mxu1 %v275_v33 }
 0x13d   :  { %533 = vmatprep.subr.bf16.mxu1 %v1143_v37 }
 0x13f   :  { %1106 = vmatmul.mubr.msk.bf16.vlgmr.msra.gmra.mxu1 %vm299_vm0, %v1138_v34 }
 0x140   :  { %1109 = vmatprep.mubr.msk.bf16.mxu1 %vm299_vm0, %v1139_v35  ;;  %534 = vmatpush1.bf16.msra.mxu1 %v1141_v38 }
 0x141   :  { %535 = vmatprep.subr.bf16.mxu1 %v1146_v39 }
 0x144   :  { %536 = vmatpush1.bf16.msra.mxu1 %v1144_v40 }
 0x145   :  { %537 = vmatprep.subr.bf16.mxu1 %v1149_v41 }
 0x147   :  { %1110 = vmatmul.mubr.msk.bf16.gmra.mxu1 %vm299_vm0, %v1140_v36 }
 0x148   :  { %538 = vmatpush1.bf16.msra.mxu1 %v1147_v42  ;;  %565 = vmatprep.mubr.bf16.mxu1 %v1350_v53 }
 0x149   :  { %539 = vmatprep.subr.bf16.mxu1 %v1152_v43 }
 0x14c   :  { %540 = vmatpush1.bf16.msra.mxu1 %v1150_v44 }
 0x14d   :  { %541 = vmatprep.subr.bf16.mxu1 %v1155_v45 }
 0x150   :  { %542 = vmatpush1.bf16.msra.mxu1 %v1153_v46 }
 0x151   :  { %543 = vmatprep.subr.bf16.mxu1 %v1158_v47 }
 0x154   :  { %544 = vmatpush1.bf16.msra.mxu1 %v1156_v48 }
 0x155   :  { %545 = vmatprep.subr.bf16.mxu1 %v1161_v49 }
 0x158   :  { %546 = vmatpush1.bf16.msra.mxu1 %v1159_v50 }
 0x159   :  { %547 = vmatprep.subr.bf16.mxu1 %v1164_v51 }
 0x15c   :  { %548 = vmatpush1.bf16.msra.mxu1 %v1162_v52 }
 0x1ff   :  { %v1435_v17 = vpop.f32.mrf.mxu1 }
 0x201   :  { %v1437_v18 = vpop.f32.mrf.mxu1 }
 0x203   :  { %v1439_v19 = vpop.f32.mrf.mxu1 }
 0x204   :  { %v384_v20 = vadd.f32 %v1439_v19, %v1435_v17 }
 0x205   :  { %v1443_v21 = vpop.f32.mrf.mxu1 }
 0x206   :  { %v385_v22 = vrot.slane %v384_v20, 4  ;;  %v377_v23 = vadd.f32 %v1443_v21, %v1437_v18 }
 0x207   :  { %v1447_v24 = vpop.f32.mrf.mxu1 }
 0x208   :  { %v386_v25 = vadd.f32 %v385_v22, %v384_v20  ;;  %v378_v26 = vrot.slane %v377_v23, 4 }
 0x209   :  { %v1449_v27 = vpop.f32.mrf.mxu1 }
 0x20a   :  { %v387_v28 = vrot.slane %v386_v25, 2  ;;  %v379_v29 = vadd.f32 %v378_v26, %v377_v23 }
 0x20b   :  { %v1451_v30 = vpop.f32.mrf.mxu1 }
 0x20c   :  { %v380_v31 = vrot.slane %v379_v29, 2  ;;  %v398_v32 = vadd.f32 %v1451_v30, %v1447_v24  ;;  %v388_v33 = vadd.f32 %v387_v28, %v386_v25 }
 0x20d   :  { %v1455_v34 = vpop.f32.mrf.mxu1 }
 0x20e   :  { %v381_v35 = vadd.f32 %v380_v31, %v379_v29  ;;  %v399_v36 = vrot.slane %v398_v32, 4  ;;  %v391_v37 = vadd.f32 %v1455_v34, %v1449_v27  ;;  %v389_v41 = vrot.slane %v388_v33, 1 }
 0x210   :  { %v382_v38 = vrot.slane %v381_v35, 1  ;;  %v400_v39 = vadd.f32 %v399_v36, %v398_v32  ;;  %v392_v40 = vrot.slane %v391_v37, 4  ;;  %v390_v47 = vadd.f32 %v389_v41, %v388_v33 }
 0x211   :  { %v1351_v32 = vmov 1966171168  }
 0x212   :  { %v401_v42 = vrot.slane %v400_v39, 2  ;;  %v393_v43 = vadd.f32 %v392_v40, %v391_v37  ;;  %v383_v44 = vadd.f32 %v382_v38, %v381_v35  ;;  %v406_v53 = vpack.c.bf16 %v390_v47, %v390_v47  ;;  %v614_v35 = vld [vmem:[%s1503_s7] sm:$0x3]  ;;  %s1352_s7 = smov [#allocation11]  }
 0x213   :  { %v829_v33 = vunpack.c.l.s4 %v1351_v32  ;;  %v619_v37 = vrot.slane %v614_v35, %v1459_v8  ;;  %s970_s11 = sshll.u32 %s1352_s7, 4  ;;  %s971_s11 = int_to_ptr.vmem [resolvable:$true] %s970_s11 }
 0x214   :  { %v402_v45 = vadd.f32 %v401_v42, %v400_v39  ;;  %v394_v46 = vrot.slane %v393_v43, 2  ;;  %v405_v50 = vpack.c.bf16 %v383_v44, %v383_v44  ;;  %v442_v58 = vunpack.c.l.b16 %v406_v53  ;;  %s1313_s12 = scalar_lea.vmem %s971_s11, 1024  ;;  %p1318_p12 = scmp.lt.s32.totalorder %s971_s11, %s971_s11 }
 0x215   :  { %v830_v36 = vunpack.c.0.s8 %v829_v33  ;;  %v623_v39 = vrot.slane %v614_v35, %v433_v10  ;;  %p1314_p11 = scmp.ne.s32.totalorder %s971_s11, %s1313_s12  ;;  %p1319_p13 = scmp.lt.s32.totalorder %s1313_s12, %s1313_s12 }
 0x216   :  { %v403_v48 = vrot.slane %v402_v45, 1  ;;  %v395_v49 = vadd.f32 %v394_v46, %v393_v43  ;;  %v441_v55 = vunpack.c.l.b16 %v405_v50 }
 0x217   :  { %v833_v38 = vsub.s32 %v830_v36, %v428_v7  ;;  %p1320_p0 = por %p1319_p13, %p1318_p12 }
 0x218   :  { %v404_v51 = vadd.f32 %v403_v48, %v402_v45  ;;  %v396_v52 = vrot.slane %v395_v49, 1  ;;  %v446_v60 = vsel %vm445_vm1, %v442_v58, %v441_v55 }
 0x219   :  { %p1321_p1 = pnand %p1320_p0, %p1314_p11 }
 0x21a   :  { %v397_v54 = vadd.f32 %v396_v52, %v395_v49  ;;  %v408_v56 = vpack.c.bf16 %v404_v51, %v404_v51 }
 0x21c   :  { %v407_v57 = vpack.c.bf16 %v397_v54, %v397_v54  ;;  %v444_v61 = vunpack.c.l.b16 %v408_v56 }
 0x21e   :  { %v443_v59 = vunpack.c.l.b16 %v407_v57 }
 0x220   :  { %v448_v62 = vsel %vm447_vm2, %v443_v59, %v446_v60 }
 0x221   :  { %v450_v63 = vsel %vm449_vm3, %v444_v61, %v448_v62 }
 0x222   :  { %v451_v0 = vpack.c.b16 %v450_v63, %v450_v63 }
 0x224   :  { %566 = vmatmul.mubr.bf16.vlgmr.msra.gmra.mxu1 %v451_v0 }
 0x2e4   :  { %v567_v13 = vpop.f32.mrf.mxu1 }
 0x2e5   :  { %v568_v14 = vadd.f32 %v567_v13, %v430_v11 }
 0x2e6   :  { %v569_v15 = vpop.f32.mrf.mxu1 }
 0x2e7   :  { %vm574_vm4 = vcmp.gt.f32.partialorder %v568_v14, 0.0  ;;  %v576_v16 = vmul.f32 0.2, %v568_v14  ;;  %v570_v20 = vadd.f32 %v569_v15, %v434_v12 }
 0x2e8   :  { %v571_v22 = vpop.f32.mrf.mxu1 }
 0x2e9   :  { %vm575_vm5 = vcmp.gt.f32.partialorder %v570_v20, 0.0  ;;  %v577_v23 = vmul.f32 0.2, %v570_v20  ;;  %v578_v26 = vsel %vm574_vm4, %v568_v14, %v576_v16 }
 0x2ea   :  { %v572_v25 = vpop.f32.mrf.mxu1  ;;  %v580_v31 = vpack.c.bf16 %v578_v26, %v578_v26 }
 0x2eb   :  { %v579_v28 = vsel %vm575_vm5, %v570_v20, %v577_v23 }
 0x2ec   :  { %v581_v29 = vpack.c.bf16 %v579_v28, %v579_v28 }
 0x2ee   :  { %818 = vmatprep.mubr.bf16.mxu0 %v581_v29 }
 0x2ef   :  { %819 = vmatmul.mubr.bf16.vlgmr.msra.gmra.mxu0 %v580_v31 }
 0x3af   :  { %v820_v40 = vpop.f32.mrf.mxu0 }
 0x3b0   :  { %v821_v41 = vadd.f32 %v820_v40, %v619_v37 }
 0x3b1   :  { %v822_v42 = vpop.f32.mrf.mxu0 }
 0x3b2   :  { %v834_v43 = vrot.slane %v821_v41, %v833_v38  ;;  %v823_v44 = vadd.f32 %v822_v42, %v623_v39 }
 0x3b3   :  { %v824_v45 = vpop.f32.mrf.mxu0 }
 0x3b4   :  { %v835_v46 = vcombine.high %v834_v43, %v834_v43  ;;  %v842_v47 = vrot.slane %v834_v43, %v833_v38  ;;  %v887_v48 = vrot.slane %v823_v44, %v833_v38 }
 0x3b5   :  { %v825_v49 = vpop.f32.mrf.mxu0 }
 0x3b6   :  { %v849_v50 = vrot.slane %v835_v46, %v833_v38  ;;  %v850_v51 = vcombine.high %v842_v47, %v842_v47  ;;  %v855_v52 = vrot.slane %v842_v47, %v1459_v8  ;;  %v888_v53 = vcombine.high %v887_v48, %v887_v48 }
 0x3b7   :  { %v895_v54 = vrot.slane %v887_v48, %v833_v38 }
 0x3b8   :  { %v851_v55 = vcombine.high %v849_v50, %v849_v50  ;;  %v859_v56 = vrot.slane %v849_v50, %v1459_v8  ;;  %v863_v57 = vrot.slane %v850_v51, %v1459_v8  ;;  %v872_v58 = vmul.f32 %v855_v52, %v1437_v18 }
 0x3b9   :  { %v873_v59 = vmul.f32 %v855_v52, %v1443_v21  ;;  %v902_v60 = vrot.slane %v888_v53, %v833_v38  ;;  %v903_v61 = vcombine.high %v895_v54, %v895_v54  ;;  %v908_v62 = vrot.slane %v895_v54, %v1459_v8 }
 0x3ba   :  { %v867_v63 = vrot.slane %v851_v55, %v1459_v8  ;;  %v874_v0 = vmul.f32 %v1435_v17, %v859_v56  ;;  %v875_v1 = vmul.f32 %v1439_v19, %v859_v56  ;;  %v876_v2 = vmul.f32 %v863_v57, %v1449_v27 }
 0x3bb   :  { %v877_v3 = vmul.f32 %v863_v57, %v1455_v34  ;;  %v904_v4 = vcombine.high %v902_v60, %v902_v60  ;;  %v912_v5 = vrot.slane %v902_v60, %v1459_v8  ;;  %v916_v18 = vrot.slane %v903_v61, %v1459_v8 }
 0x3bc   :  { %v878_v21 = vmul.f32 %v1447_v24, %v867_v63  ;;  %v879_v6 = vmul.f32 %v1451_v30, %v867_v63  ;;  %v925_v7 = vadd.f32 %v908_v62, %v872_v58  ;;  %v926_v9 = vadd.f32 %v908_v62, %v873_v59 }
 0x3bd   :  { %v920_v10 = vrot.slane %v904_v4, %v1459_v8  ;;  %v927_v17 = vadd.f32 %v912_v5, %v874_v0  ;;  %v928_v11 = vadd.f32 %v912_v5, %v875_v1  ;;  %v929_v19 = vadd.f32 %v916_v18, %v876_v2 }
 0x3be   :  { %v930_v12 = vadd.f32 %v916_v18, %v877_v3  ;;  %vm933_vm6 = vcmp.gt.f32.partialorder %v925_v7, 0.0  ;;  %vm934_vm7 = vcmp.gt.f32.partialorder %v926_v9, 0.0  ;;  %v941_v27 = vmul.f32 0.2, %v925_v7 }
 0x3bf   :  { %v931_v34 = vadd.f32 %v920_v10, %v878_v21  ;;  %v932_v13 = vadd.f32 %v920_v10, %v879_v6  ;;  %vm935_vm8 = vcmp.gt.f32.partialorder %v927_v17, 0.0  ;;  %vm936_vm9 = vcmp.gt.f32.partialorder %v928_v11, 0.0 }
 0x3c0   :  { %vm937_vm10 = vcmp.gt.f32.partialorder %v929_v19, 0.0  ;;  %vm938_vm11 = vcmp.gt.f32.partialorder %v930_v12, 0.0  ;;  %v942_v24 = vmul.f32 0.2, %v926_v9  ;;  %v943_v30 = vmul.f32 0.2, %v927_v17 }
 0x3c1   :  { %vm939_vm12 = vcmp.gt.f32.partialorder %v931_v34, 0.0  ;;  %vm940_vm13 = vcmp.gt.f32.partialorder %v932_v13, 0.0  ;;  %v944_v8 = vmul.f32 0.2, %v928_v11  ;;  %v945_v14 = vmul.f32 0.2, %v929_v19 }
 0x3c2   :  { %v946_v15 = vmul.f32 0.2, %v930_v12  ;;  %v947_v16 = vmul.f32 0.2, %v931_v34  ;;  %v948_v20 = vmul.f32 0.2, %v932_v13  ;;  %v949_v22 = vsel %vm933_vm6, %v925_v7, %v941_v27 }
 0x3c3   :  { %v950_v23 = vsel %vm934_vm7, %v926_v9, %v942_v24  ;;  %v951_v25 = vsel %vm935_vm8, %v927_v17, %v943_v30  ;;  %v952_v26 = vsel %vm936_vm9, %v928_v11, %v944_v8  ;;  %v953_v28 = vsel %vm937_vm10, %v929_v19, %v945_v14  ;;  %957 = vst [vmem:[#allocation11] sm:$0xff] %v949_v22 }
 0x3c4   :  { %v954_v29 = vsel %vm938_vm11, %v930_v12, %v946_v15  ;;  %v955_v31 = vsel %vm939_vm12, %v931_v34, %v947_v16  ;;  %v956_v32 = vsel %vm940_vm13, %v932_v13, %v948_v20  ;;  %958 = vst [vmem:[#allocation11 + $0x8] sm:$0xff] %v950_v23  ;;  %959 = vst [vmem:[#allocation11 + $0x10] sm:$0xff] %v951_v25 }
 0x3c5   :  { %960 = vst [vmem:[#allocation11 + $0x18] sm:$0xff] %v952_v26  ;;  %961 = vst [vmem:[#allocation11 + $0x20] sm:$0xff] %v953_v28 }
 0x3c6   :  { %962 = vst [vmem:[#allocation11 + $0x28] sm:$0xff] %v954_v29  ;;  %963 = vst [vmem:[#allocation11 + $0x30] sm:$0xff] %v955_v31 }
 0x3c7   :  { %964 = vst [vmem:[#allocation11 + $0x38] sm:$0xff] %v956_v32 }
 0x3c8   :  { %1324 = shalt.err (!%p1321_p1)
}
 0x3c9   :  { %976 = dma.vmem_to_hbm [thread:$0]  %s971_s11, 1024, %s1504_s8, [#allocation4], %s1345_s15, %s1345_s15, %s1346_s16  }
 0x3ca   :  { %1339 = dma.done.wait [#allocation4], 1024  }
 0x3cb   :  { %1340 = vsyncadd [#allocation4], 4294966272 }
 0x3cc   :  { %980 = vsyncpa [#allocation3], 1 }
 0x3cd   :  { %981 = vsyncpa [#allocation6], 1 }
 0x3ce   :  { %982 = vsyncpa [#allocation9], 1 }
 0x3cf   :  { %983 = vsyncpa [#allocation4], 1 }

</bundles_post_ra>
